<compile_context>
chip_gen: v6e
topology: v6e:2x2x1
jax: 0.10.0
libtpu: 0.0.40
codegen_flags: <defaults>
</compile_context>

<pallas_src>
import math
import jax
import jax.numpy as jnp
from jax.experimental import pallas as pl
from jax.experimental.pallas import tpu as pltpu


def _make_time_embedding_kernel(half_dim: int, log_scale: float):
    """Kernel factory; half_dim and log_scale are compile-time constants."""
    quarter = 2 * half_dim

    def kernel(t_ref, w1_ref, b_ref, w2_ref, out_ref):
        # t_ref:   (tile_b, 1)              f32
        # w1_ref:  (quarter, n_channels)    weight dtype (bf16 or f32), rows = [sin | cos]
        # b_ref:   (2, n_channels)          f32   (row 0 = b1, row 1 = b2)
        # w2_ref:  (n_channels, n_channels) weight dtype
        # out_ref: (tile_b, n_channels)     out dtype (f32 or bf16)
        t = t_ref[...]                                                     # (tile_b, 1)

        # Phase-shifted sinusoid table, computed in-kernel (no freq DMA, one EUP exp
        # of `quarter` values + one EUP sin per element; no lane-axis concat).
        idx = jax.lax.broadcasted_iota(jnp.int32, (1, quarter), 1)         # (1, quarter)
        idx_mod = jnp.where(idx >= half_dim, idx - half_dim, idx).astype(jnp.float32)
        freq = jnp.exp(idx_mod * (-log_scale))                             # (1, quarter)
        phase = jnp.where(idx >= half_dim,
                          jnp.float32(math.pi / 2.0), jnp.float32(0.0))    # (1, quarter)

        emb = jnp.sin(t * freq + phase)                                    # (tile_b, quarter) f32

        w_dtype = w1_ref.dtype
        b1 = b_ref[0:1, :]
        b2 = b_ref[1:2, :]

        # Layer 1: single K=quarter MXU push (w1 rows already ordered [sin; cos]).
        h = jnp.dot(emb.astype(w_dtype), w1_ref[...],
                    preferred_element_type=jnp.float32) + b1               # (tile_b, C) f32

        # SiLU in f32 (v5e has no bf16 VPU/EUP path).
        h = h * jax.nn.sigmoid(h)

        out = jnp.dot(h.astype(w_dtype), w2_ref[...],
                      preferred_element_type=jnp.float32) + b2
        out_ref[...] = out.astype(out_ref.dtype)

    return kernel


def time_embedding(t, w1, b1, w2, b2, n_channels, *, tile_b=512,
                   weight_dtype=jnp.bfloat16, out_dtype=jnp.float32):
    """Pallas TimeEmbedding forward.

    t:  (B,) timesteps.
    w1: (n_channels//4, n_channels), b1: (n_channels,)   -- lin1, stored (in, out)
    w2: (n_channels,   n_channels),  b2: (n_channels,)   -- lin2, stored (in, out)
    """
    assert n_channels % 128 == 0, "n_channels must be a multiple of 128 (lane-dense output)"
    B = t.shape[0]
    half_dim = n_channels // 8
    quarter = n_channels // 4
    log_scale = math.log(10000.0) / (half_dim - 1)

    w_itemsize = jnp.dtype(weight_dtype).itemsize
    out_itemsize = jnp.dtype(out_dtype).itemsize

    # Batch tiling: 128-row-aligned tiles for large B (MXU M alignment on v5e),
    # sublane-aligned (8) for tiny B.  Large tiles amortize per-grid-step overhead.
    align = 128 if B >= 128 else 8
    B_pad = ((B + align - 1) // align) * align
    tb = max(align, (min(tile_b, B_pad) // align) * align)
    B_pad = ((B_pad + tb - 1) // tb) * tb
    grid_b = B_pad // tb

    t2 = jnp.zeros((B_pad, 1), jnp.float32).at[:B, 0].set(t.astype(jnp.float32))
    bias = jnp.stack([b1.astype(jnp.float32), b2.astype(jnp.float32)], axis=0)  # (2, C)
    w1c = w1.astype(weight_dtype)
    w2c = w2.astype(weight_dtype)

    # Megacore gating (v7x): "parallel" makes each TC pull its own copy of the
    # grid-invariant weights, so only shard when per-TC batch traffic dominates.
    weight_bytes = (quarter + n_channels) * n_channels * w_itemsize + 2 * n_channels * 4
    per_tc_batch_bytes = (B_pad // 2) * (n_channels * out_itemsize + 4)
    use_parallel = (grid_b > 1) and (per_tc_batch_bytes > 2 * weight_bytes)
    dim_semantics = ("parallel",) if use_parallel else ("arbitrary",)

    # Explicit VMEM budget (double-buffered I/O + f32 temporaries, 2x margin),
    # clamped to stay within v7x's 64 MiB physical VMEM.
    vmem_est = (
        2 * (tb * 4                                   # t tile
             + quarter * n_channels * w_itemsize      # w1
             + 2 * n_channels * 4                     # packed biases
             + n_channels * n_channels * w_itemsize)  # w2
        + 2 * tb * n_channels * out_itemsize          # output tile
        + tb * quarter * 4 + 4 * tb * n_channels * 4  # emb / h / sigmoid / out temporaries
    )
    vmem_limit = int(min(64 << 20, max(16 << 20, 2 * vmem_est)))

    cost = pl.CostEstimate(
        flops=2 * B_pad * (quarter * n_channels + n_channels * n_channels),
        transcendentals=B_pad * (quarter + 2 * n_channels),   # exp/sin table + sigmoid
        bytes_accessed=weight_bytes + B_pad * 4 + B_pad * n_channels * out_itemsize,
    )

    kernel = _make_time_embedding_kernel(half_dim, log_scale)

    out = pl.pallas_call(
        kernel,
        out_shape=jax.ShapeDtypeStruct((B_pad, n_channels), out_dtype),
        grid=(grid_b,),
        in_specs=[
            pl.BlockSpec((tb, 1), lambda i: (i, 0)),                     # timesteps (tiled)
            pl.BlockSpec((quarter, n_channels), lambda i: (0, 0)),       # w1 (grid-invariant)
            pl.BlockSpec((2, n_channels), lambda i: (0, 0)),             # packed biases
            pl.BlockSpec((n_channels, n_channels), lambda i: (0, 0)),    # w2 (grid-invariant)
        ],
        out_specs=pl.BlockSpec((tb, n_channels), lambda i: (i, 0)),
        compiler_params=pltpu.CompilerParams(
            dimension_semantics=dim_semantics,
            vmem_limit_bytes=vmem_limit),
        cost_estimate=cost,
    )(t2, w1c, bias, w2c)
    return out[:B]


def time_embedding_ref(t, w1, b1, w2, b2, n_channels):
    """Pure-JAX reference mirroring the PyTorch forward."""
    half_dim = n_channels // 8
    emb_scale = math.log(10000.0) / (half_dim - 1)
    freq = jnp.exp(jnp.arange(half_dim, dtype=jnp.float32) * -emb_scale)
    emb = t[:, None].astype(jnp.float32) * freq[None, :]
    emb = jnp.concatenate((jnp.sin(emb), jnp.cos(emb)), axis=1)
    h = emb @ w1 + b1
    h = h * jax.nn.sigmoid(h)
    return h @ w2 + b2


if __name__ == "__main__":
    n_channels = 128          # => sinusoidal dim 32, half_dim 16
    quarter = n_channels // 4

    key = jax.random.PRNGKey(0)
    k_t, k_w1, k_b1, k_w2, k_b2 = jax.random.split(key, 5)

    # Deterministic synthetic parameters (PyTorch Linear semantics, stored as (in, out)).
    w1 = jax.random.normal(k_w1, (quarter, n_channels), jnp.float32) / math.sqrt(quarter)
    b1 = jax.random.normal(k_b1, (n_channels,), jnp.float32) * 0.01
    w2 = jax.random.normal(k_w2, (n_channels, n_channels), jnp.float32) / math.sqrt(n_channels)
    b2 = jax.random.normal(k_b2, (n_channels,), jnp.float32) * 0.01

    def check(B, weight_dtype, out_dtype, tol):
        t = jax.random.uniform(jax.random.fold_in(k_t, B), (B,), jnp.float32,
                               minval=0.0, maxval=1000.0)
        out = jax.block_until_ready(
            time_embedding(t, w1, b1, w2, b2, n_channels,
                           weight_dtype=weight_dtype, out_dtype=out_dtype))
        ref = time_embedding_ref(t, w1, b1, w2, b2, n_channels)
        assert out.shape == (B, n_channels)
        err = float(jnp.max(jnp.abs(out.astype(jnp.float32) - ref))
                    / (jnp.max(jnp.abs(ref)) + 1e-6))
        assert err < tol, f"B={B} w={weight_dtype} out={out_dtype}: rel err {err}"

    check(8,   jnp.float32,  jnp.float32,  3e-2)   # small batch, f32 weights
    check(272, jnp.float32,  jnp.float32,  3e-2)   # padded batch, 128-aligned tile
    check(8,   jnp.bfloat16, jnp.float32,  8e-2)   # default bf16 weights, f32 acc/out
    check(272, jnp.bfloat16, jnp.bfloat16, 8e-2)   # bf16 weights + bf16 output writeback

    print("KERNEL_OK")
</pallas_src>

<mosaic_0001>
module attributes {stable_mosaic.version = 11 : i64} {
  func.func @kernel(%arg0: i32, %arg1: memref<8x1xf32, #tpu.memory_space<vmem>>, %arg2: memref<32x128xf32, #tpu.memory_space<vmem>>, %arg3: memref<2x128xf32, #tpu.memory_space<vmem>>, %arg4: memref<128x128xf32, #tpu.memory_space<vmem>>, %arg5: memref<8x128xf32, #tpu.memory_space<vmem>>) attributes {dimension_semantics = [#tpu.dimension_semantics<arbitrary>], iteration_bounds = array<i64: 1>, scalar_prefetch = 0 : i64, scratch_operands = 0 : i64, tpu.core_type = #tpu.core_type<tc>, window_params = [{transform_indices = @transform_0, window_bounds = array<i64: 8, 1>}, {pipeline_mode = #tpu.pipeline_mode<synchronous>, transform_indices = @transform_1, window_bounds = array<i64: 32, 128>}, {pipeline_mode = #tpu.pipeline_mode<synchronous>, transform_indices = @transform_2, window_bounds = array<i64: 2, 128>}, {pipeline_mode = #tpu.pipeline_mode<synchronous>, transform_indices = @transform_3, window_bounds = array<i64: 128, 128>}, {transform_indices = @transform_4, window_bounds = array<i64: 8, 128>}]} {
    %c0 = arith.constant 0 : index
    %c0_0 = arith.constant 0 : index
    %0 = vector.load %arg1[%c0, %c0_0] : memref<8x1xf32, #tpu.memory_space<vmem>>, vector<8x1xf32>
    %1 = tpu.iota {dimensions = array<i32: 1>} : vector<1x32xi32>
    %c16_i32 = arith.constant 16 : i32
    %2 = vector.broadcast %c16_i32 : i32 to vector<1x32xi32>
    %3 = arith.cmpi sge, %1, %2 : vector<1x32xi32>
    %c16_i32_1 = arith.constant 16 : i32
    %4 = vector.broadcast %c16_i32_1 : i32 to vector<1x32xi32>
    %5 = arith.subi %1, %4 : vector<1x32xi32>
    %6 = arith.select %3, %5, %1 : vector<1x32xi1>, vector<1x32xi32>
    %7 = arith.sitofp %6 : vector<1x32xi32> to vector<1x32xf32>
    %cst = arith.constant -0.614022672 : f32
    %8 = vector.broadcast %cst : f32 to vector<1x32xf32>
    %9 = arith.mulf %7, %8 : vector<1x32xf32>
    %10 = math.exp %9 : vector<1x32xf32>
    %c16_i32_2 = arith.constant 16 : i32
    %11 = vector.broadcast %c16_i32_2 : i32 to vector<1x32xi32>
    %12 = arith.cmpi sge, %1, %11 : vector<1x32xi32>
    %cst_3 = arith.constant 1.57079637 : f32
    %cst_4 = arith.constant 0.000000e+00 : f32
    %13 = vector.broadcast %cst_3 : f32 to vector<1x32xf32>
    %14 = vector.broadcast %cst_4 : f32 to vector<1x32xf32>
    %15 = arith.select %12, %13, %14 : vector<1x32xi1>, vector<1x32xf32>
    %16 = vector.broadcast %0 : vector<8x1xf32> to vector<8x32xf32>
    %17 = vector.broadcast %10 : vector<1x32xf32> to vector<8x32xf32>
    %18 = arith.mulf %16, %17 : vector<8x32xf32>
    %19 = vector.broadcast %15 : vector<1x32xf32> to vector<8x32xf32>
    %20 = arith.addf %18, %19 : vector<8x32xf32>
    %21 = math.sin %20 : vector<8x32xf32>
    %c0_5 = arith.constant 0 : index
    %c0_6 = arith.constant 0 : index
    %22 = vector.load %arg3[%c0_5, %c0_6] : memref<2x128xf32, #tpu.memory_space<vmem>>, vector<1x128xf32>
    %c1 = arith.constant 1 : index
    %c0_7 = arith.constant 0 : index
    %23 = vector.load %arg3[%c1, %c0_7] : memref<2x128xf32, #tpu.memory_space<vmem>>, vector<1x128xf32>
    %c0_8 = arith.constant 0 : index
    %c0_9 = arith.constant 0 : index
    %24 = vector.load %arg2[%c0_8, %c0_9] : memref<32x128xf32, #tpu.memory_space<vmem>>, vector<32x128xf32>
    %cst_10 = arith.constant dense<0.000000e+00> : vector<8x128xf32>
    %25 = tpu.matmul %21, %24, %cst_10 {dimension_numbers = #tpu.dot_dimension_numbers<[1], [0], [0], [1], [0, 0, 1, 1], [], []>} : vector<8x32xf32>, vector<32x128xf32>, vector<8x128xf32> -> vector<8x128xf32>
    %26 = vector.broadcast %22 : vector<1x128xf32> to vector<8x128xf32>
    %27 = arith.addf %25, %26 : vector<8x128xf32>
    %28 = arith.negf %27 : vector<8x128xf32>
    %29 = math.exp %28 : vector<8x128xf32>
    %cst_11 = arith.constant 1.000000e+00 : f32
    %30 = vector.broadcast %cst_11 : f32 to vector<8x128xf32>
    %31 = arith.addf %30, %29 : vector<8x128xf32>
    %32 = arith.divf %30, %31 : vector<8x128xf32>
    %33 = arith.mulf %27, %32 : vector<8x128xf32>
    %c0_12 = arith.constant 0 : index
    %c0_13 = arith.constant 0 : index
    %34 = vector.load %arg4[%c0_12, %c0_13] : memref<128x128xf32, #tpu.memory_space<vmem>>, vector<128x128xf32>
    %cst_14 = arith.constant dense<0.000000e+00> : vector<8x128xf32>
    %35 = tpu.matmul %33, %34, %cst_14 {dimension_numbers = #tpu.dot_dimension_numbers<[1], [0], [0], [1], [0, 0, 1, 1], [], []>} : vector<8x128xf32>, vector<128x128xf32>, vector<8x128xf32> -> vector<8x128xf32>
    %36 = vector.broadcast %23 : vector<1x128xf32> to vector<8x128xf32>
    %37 = arith.addf %35, %36 : vector<8x128xf32>
    %c0_15 = arith.constant 0 : index
    %c0_16 = arith.constant 0 : index
    %38 = vector.load %arg5[%c0_15, %c0_16] : memref<8x128xf32, #tpu.memory_space<vmem>>, vector<8x128xf32>
    tpu.vector_store %arg5[%c0_15, %c0_16], %37 {strides = array<i32>} : memref<8x128xf32, #tpu.memory_space<vmem>>, vector<8x128xf32>,
    return
  }
  func.func @transform_0(%arg0: i32) -> (i32, i32) {
    %c0_i32 = arith.constant 0 : i32
    %c0_i32_0 = arith.constant 0 : i32
    return %arg0, %c0_i32 : i32, i32
  }
  func.func @transform_1(%arg0: i32) -> (i32, i32) {
    %c0_i32 = arith.constant 0 : i32
    %c0_i32_0 = arith.constant 0 : i32
    %c0_i32_1 = arith.constant 0 : i32
    return %c0_i32, %c0_i32_0 : i32, i32
  }
  func.func @transform_2(%arg0: i32) -> (i32, i32) {
    %c0_i32 = arith.constant 0 : i32
    %c0_i32_0 = arith.constant 0 : i32
    %c0_i32_1 = arith.constant 0 : i32
    return %c0_i32, %c0_i32_0 : i32, i32
  }
  func.func @transform_3(%arg0: i32) -> (i32, i32) {
    %c0_i32 = arith.constant 0 : i32
    %c0_i32_0 = arith.constant 0 : i32
    %c0_i32_1 = arith.constant 0 : i32
    return %c0_i32, %c0_i32_0 : i32, i32
  }
  func.func @transform_4(%arg0: i32) -> (i32, i32) {
    %c0_i32 = arith.constant 0 : i32
    %c0_i32_0 = arith.constant 0 : i32
    return %arg0, %c0_i32 : i32, i32
  }
}

</mosaic_0001>

<bundles_post_ra>
// kernel: tpu_custom_call.1
= control target key start
LH: loop header
LB: loop body
LE: loop exit
PB: predicated region body
PF: predicated region fallthrough
CT: control target
= control target key end

     0   :  { %9 = vsyncpa [#allocation3], 0  ;;  %s639_s0 = inlined_call_operand.vmem [shape: f32[8,1], index: 0, kind: input, shape index: {}]   ;;  %s640_s1 = inlined_call_operand.hbm [shape: f32[32,128], index: 1, kind: input, shape index: {}]   ;;  %s641_s2 = inlined_call_operand.vmem [shape: f32[2,128], index: 2, kind: input, shape index: {}]   ;;  %s642_s3 = inlined_call_operand.hbm [shape: f32[128,128], index: 3, kind: input, shape index: {}]   ;;  %s643_s4 = inlined_call_operand.hbm [shape: f32[8,128], index: 4, kind: output, shape index: {}]  }
   0x1   :  { %10 = vsyncpa [#allocation6], 0 }
   0x2   :  { %11 = vsyncpa [#allocation4], 0  ;;  %s538_s15 = smov [#allocation2]  }
   0x3   :  { %s19_s16 = sshll.u32 %s538_s15, 4  ;;  %s20_s16 = int_to_ptr.vmem [resolvable:$true] %s19_s16 }
   0x4   :  { %s480_s17 = scalar_lea.vmem %s20_s16, 512  ;;  %p485_p1 = scmp.lt.s32.totalorder %s20_s16, %s20_s16 }
   0x5   :  { %p481_p0 = scmp.ne.s32.totalorder %s20_s16, %s480_s17  ;;  %p486_p2 = scmp.lt.s32.totalorder %s480_s17, %s480_s17 }
   0x7   :  { %p487_p3 = por %p486_p2, %p485_p1 }
   0x9   :  { %p488_p4 = pnand %p487_p3, %p481_p0 }
   0xb   :  { %491 = shalt.err (!%p488_p4)
}
   0xc   :  { %s539_s18 = smov 128   ;;  %s540_s19 = smov 8  }
   0xd   :  { %25 = dma.hbm_to_vmem [thread:$0]  %s640_s1, 512, %s20_s16, [#allocation3], %s539_s18, %s539_s18, %s540_s19  }
   0xe   :  { %s541_s22 = smov [#allocation5]  }
   0xf   :  { %s33_s23 = sshll.u32 %s541_s22, 4  ;;  %s34_s23 = int_to_ptr.vmem [resolvable:$true] %s33_s23 }
  0x10   :  { %s500_s24 = scalar_lea.vmem %s34_s23, 2048  ;;  %p505_p6 = scmp.lt.s32.totalorder %s34_s23, %s34_s23 }
  0x11   :  { %p501_p5 = scmp.ne.s32.totalorder %s34_s23, %s500_s24  ;;  %p506_p7 = scmp.lt.s32.totalorder %s500_s24, %s500_s24 }
  0x13   :  { %p507_p8 = por %p506_p7, %p505_p6 }
  0x15   :  { %p508_p9 = pnand %p507_p8, %p501_p5 }
  0x17   :  { %511 = shalt.err (!%p508_p9)
}
  0x18   :  { %39 = dma.hbm_to_vmem [thread:$0]  %s642_s3, 2048, %s34_s23, [#allocation6], %s539_s18, %s539_s18, %s540_s19  }
  0x19   :  { %532 = dma.done.wait [#allocation3], 512  }
  0x1a   :  { %533 = vsyncadd [#allocation3], 4294966784 }
  0x1b   :  { %534 = dma.done.wait [#allocation6], 2048  }
  0x1c   :  { %535 = vsyncadd [#allocation6], 4294965248  ;;  %v542_v0 = vmov 0   ;;  %v543_v1 = vmov 0.0   ;;  %v46_v2 = vld [vmem:[%s639_s0] sm:$0xff]  ;;  %v173_v3 = vld [vmem:[#allocation2 + $0x18] sm:$0xff]  ;;  %v47_v7 = vlaneseq }
  0x1d   :  { %461 = vset.pattern.permute.xlu0 %v542_v0  ;;  %397 = vmatprep.subr.mxu0 %v543_v1  ;;  %v172_v4 = vld [vmem:[#allocation2 + $0x10] sm:$0xff]  ;;  %vm544_vm0 = vmmov 0   ;;  %v171_v5 = vld [vmem:[#allocation2 + $0x8] sm:$0xff]  ;;  %v170_v6 = vld [vmem:[#allocation2] sm:$0xff]  ;;  %v545_v30 = vmov 2102212464  }
  0x1e   :  { %408 = vmatprep.subr.mxu1 %v543_v1  ;;  %59 = vperm.xlu0 %461, %v46_v2   ;;  %v48_v8 = vand.u32 127, %v47_v7  ;;  %v546_v32 = vmov 920167782   ;;  %v547_v36 = vmov 1326507024   ;;  %vm178_vm14 = vcmask 261120  }
  0x1f   :  { %398 = vmatpush3.msra.mxu0 %v173_v3  ;;  %405 = vmatprep.mubr.msk.f32.mxu0 %vm544_vm0, %v543_v1  ;;  %v548_v38 = vmov 683565275   ;;  %v549_v40 = vmov 2475754826   ;;  %v550_v43 = vmov 2131351028  }
  0x20   :  { %399 = vmatprep.subr.mxu0 %v543_v1  ;;  %440 = vmatprep.mubr.msk.f32.mxu1 %vm544_vm0, %v543_v1  ;;  %v366_v9 = vadd.s32 4294967280, %v48_v8  ;;  %vm49_vm1 = vcmp.ge.s32.totalorder %v48_v8, 16  ;;  %s551_s30 = smov [#allocation7]  }
  0x21   :  { %400 = vmatpush3.msra.mxu0 %v172_v4  ;;  %v56_v15 = vsel %vm49_vm1, 1.5707964, %v543_v1  ;;  %s356_s5 = sshll.u32 %s551_s30, 4  ;;  %s357_s5 = int_to_ptr.vmem [resolvable:$true] %s356_s5 }
  0x22   :  { %401 = vmatprep.subr.mxu0 %v543_v1  ;;  %v51_v10 = vsel %vm49_vm1, %v366_v9, %v48_v8  ;;  %s512_s6 = scalar_lea.vmem %s357_s5, 128  ;;  %p517_p11 = scmp.lt.s32.totalorder %s357_s5, %s357_s5 }
  0x23   :  { %402 = vmatpush3.msra.mxu0 %v171_v5  ;;  %v52_v11 = vcvt.s32.f32 %v51_v10  ;;  %p513_p10 = scmp.ne.s32.totalorder %s357_s5, %s512_s6  ;;  %p518_p12 = scmp.lt.s32.totalorder %s512_s6, %s512_s6 }
  0x24   :  { %403 = vmatprep.subr.mxu0 %v543_v1 }
  0x25   :  { %404 = vmatpush3.msra.mxu0 %v170_v6  ;;  %v53_v12 = vmul.f32 -0.6140227, %v52_v11  ;;  %p519_p13 = por %p518_p12, %p517_p11 }
  0x27   :  { %v54_v13 = vmul.f32 1.442695, %v53_v12  ;;  %p520_p0 = pnand %p519_p13, %p513_p10 }
  0x29   :  { %462 = vpow2.f32 %v54_v13 }
  0x36   :  { %v463_v14 = vpop.eup %462 }
  0x99   :  { %v60_v16 = vpop.permute.xlu0 %59 }
  0x9a   :  { %v62_v17 = vmul.f32 %v463_v14, %v60_v16 }
  0x9c   :  { %v594_v18 = vadd.f32 %v62_v17, %v56_v15 }
  0x9e   :  { %v67_v19 = vand.u32 2139095040, %v594_v18  ;;  %v64_v20 = vand.u32 2147483647, %v594_v18  ;;  %vm66_vm9 = vcmp.lt.s32.totalorder %v594_v18, 0  ;;  %vm156_vm15 = vweird.f32 %v594_v18 }
  0xa0   :  { %v68_v21 = vshrl.u32 %v67_v19, 23  ;;  %v71_v23 = vand.u32 8388607, %v64_v20  ;;  %vm65_vm10 = vcmp.le.f32.partialorder %v64_v20, 0.7853982 }
  0xa2   :  { %v367_v22 = vadd.s32 4294967169, %v68_v21  ;;  %v72_v26 = vor.u32 8388608, %v71_v23 }
  0xa4   :  { %v74_v24 = vadd.s32 1, %v367_v22  ;;  %v112_v34 = vshll.u32 %v72_v26, 8 }
  0xa6   :  { %vm75_vm2 = vcmp.gt.s32.totalorder %v74_v24, 0 }
  0xa7   :  { %v76_v25 = vsel %vm75_vm2, %v74_v24, 0 }
  0xa8   :  { %v78_v27 = vand.u32 31, %v76_v25  ;;  %v77_v28 = vshrl.u32 %v76_v25, 5 }
  0xaa   :  { %v79_v29 = vsub.s32 32, %v78_v27  ;;  %v90_v31 = vshll.u32 %v545_v30, %v78_v27  ;;  %v93_v33 = vshll.u32 %v546_v32, %v78_v27  ;;  %v81_v39 = vshll.u32 %v548_v38, %v78_v27 }
  0xab   :  { %v84_v42 = vshll.u32 %v549_v40, %v78_v27  ;;  %v87_v45 = vshll.u32 %v550_v43, %v78_v27  ;;  %vm99_vm3 = vcmp.lt.s32.totalorder %v77_v28, 4  ;;  %vm96_vm4 = vcmp.lt.s32.totalorder %v77_v28, 1 }
  0xac   :  { %v91_v35 = vshrl.u32 %v546_v32, %v79_v29  ;;  %v94_v37 = vshrl.u32 %v547_v36, %v79_v29  ;;  %v82_v41 = vshrl.u32 %v549_v40, %v79_v29  ;;  %v85_v44 = vshrl.u32 %v550_v43, %v79_v29 }
  0xad   :  { %v88_v46 = vshrl.u32 %v545_v30, %v79_v29  ;;  %v80_v50 = vshrl.u32 %v548_v38, %v79_v29  ;;  %vm97_vm5 = vcmp.lt.s32.totalorder %v77_v28, 2  ;;  %vm98_vm6 = vcmp.lt.s32.totalorder %v77_v28, 3 }
  0xae   :  { %v92_v47 = vor.u32 %v91_v35, %v90_v31  ;;  %v95_v48 = vor.u32 %v94_v37, %v93_v33  ;;  %v83_v49 = vor.u32 %v82_v41, %v81_v39  ;;  %v86_v51 = vor.u32 %v85_v44, %v84_v42 }
  0xaf   :  { %v89_v52 = vor.u32 %v88_v46, %v87_v45 }
  0xb0   :  { %v105_v53 = vsel %vm99_vm3, %v92_v47, 920167782  ;;  %v109_v54 = vsel %vm99_vm3, %v95_v48, 1326507024  ;;  %v104_v56 = vsel %vm96_vm4, %v83_v49, %v86_v51  ;;  %v100_v59 = vsel %vm96_vm4, %v80_v50, %v83_v49  ;;  %v274_v48 = vld [vmem:[#allocation5 + $0x78] sm:$0xff]  ;;  %v273_v49 = vld [vmem:[#allocation5 + $0x70] sm:$0xff] }
  0xb1   :  { %v101_v55 = vsel %vm99_vm3, %v89_v52, 2102212464  ;;  %v106_v57 = vsel %vm98_vm6, %v89_v52, %v105_v53  ;;  %v108_v58 = vsel %vm96_vm4, %v86_v51, %v89_v52  ;;  %v110_v62 = vsel %vm98_vm6, %v92_v47, %v109_v54  ;;  %409 = vmatpush3.msra.mxu1 %v274_v48  ;;  %v272_v50 = vld [vmem:[#allocation5 + $0x68] sm:$0xff]  ;;  %v269_v52 = vld [vmem:[#allocation5 + $0x50] sm:$0xff]  ;;  %v267_v54 = vld [vmem:[#allocation5 + $0x40] sm:$0xff] }
  0xb2   :  { %v102_v60 = vsel %vm98_vm6, %v86_v51, %v101_v55  ;;  %v107_v61 = vsel %vm97_vm5, %v104_v56, %v106_v57  ;;  %v111_v63 = vsel %vm97_vm5, %v108_v58, %v110_v62  ;;  %410 = vmatprep.subr.mxu1 %v543_v1  ;;  %v271_v51 = vld [vmem:[#allocation5 + $0x60] sm:$0xff]  ;;  %v268_v53 = vld [vmem:[#allocation5 + $0x48] sm:$0xff]  ;;  %v266_v55 = vld [vmem:[#allocation5 + $0x38] sm:$0xff] }
  0xb3   :  { %v600_v0 = vmul.u32.u64.low %v112_v34, %v107_v61  ;;  %v601_v2 = vmul.u32.u64.high %v112_v34, %v107_v61, %v600_v0  ;;  %v603_v3 = vmul.u32.u64.low %v112_v34, %v111_v63  ;;  %v604_v4 = vmul.u32.u64.high %v112_v34, %v111_v63, %v603_v3  ;;  %411 = vmatpush3.msra.mxu1 %v273_v49  ;;  %v265_v56 = vld [vmem:[#allocation5 + $0x30] sm:$0xff]  ;;  %v264_v57 = vld [vmem:[#allocation5 + $0x28] sm:$0xff]  ;;  %v263_v58 = vld [vmem:[#allocation5 + $0x20] sm:$0xff] }
  0xb4   :  { %v103_v5 = vsel %vm97_vm5, %v100_v59, %v102_v60  ;;  %412 = vmatprep.subr.mxu1 %v543_v1  ;;  %v262_v59 = vld [vmem:[#allocation5 + $0x18] sm:$0xff]  ;;  %v261_v60 = vld [vmem:[#allocation5 + $0x10] sm:$0xff]  ;;  %v260_v61 = vld [vmem:[#allocation5 + $0x8] sm:$0xff] }
  0xb5   :  { %v122_v6 = vadd.s32 1, %v601_v2  ;;  %v119_v7 = vmul.u32 %v112_v34, %v103_v5  ;;  %vm121_vm7 = vc.u32 %v604_v4, %v600_v0  ;;  %v120_v21 = vadd.s32 %v600_v0, %v604_v4  ;;  %413 = vmatpush3.msra.mxu1 %v272_v50  ;;  %v259_v62 = vld [vmem:[#allocation5] sm:$0xff] }
  0xb6   :  { %414 = vmatprep.subr.mxu1 %v543_v1  ;;  %v371_v63 = vld [vmem:[%s641_s2] ss:$0 sm:$0xff] }
  0xb7   :  { %v123_v8 = vsel %vm121_vm7, %v122_v6, %v601_v2  ;;  %415 = vmatpush3.msra.mxu1 %v271_v51 }
  0xb8   :  { %v124_v9 = vadd.s32 %v123_v8, %v119_v7  ;;  %416 = vmatprep.subr.mxu1 %v543_v1 }
  0xba   :  { %v125_v10 = vadd.s32 536870912, %v124_v9 }
  0xbc   :  { %v126_v11 = vshrl.u32 %v125_v10, 30 }
  0xbe   :  { %v127_v12 = vshll.u32 %v126_v11, 30  ;;  %v150_v34 = vsub.s32 4, %v126_v11 }
  0xc0   :  { %v128_v13 = vsub.s32 %v124_v9, %v127_v12  ;;  %v151_v37 = vsel %vm66_vm9, %v150_v34, %v126_v11 }
  0xc1   :  { %v153_v38 = vsel %vm65_vm10, 0, %v151_v37 }
  0xc2   :  { %v130_v14 = vsub.s32 0, %v128_v13  ;;  %v157_v39 = vadd.s32 3, %v153_v38 }
  0xc4   :  { %v368_v15 = vmin.u32 %v130_v14, %v128_v13  ;;  %v158_v40 = vand.u32 3, %v157_v39 }
  0xc6   :  { %v132_v16 = vclz %v368_v15  ;;  %vm163_vm11 = vcmp.eq.s32.totalorder %v158_v40, 2  ;;  %vm160_vm12 = vcmp.eq.s32.totalorder %v158_v40, 0  ;;  %vm159_vm13 = vcmp.lt.s32.totalorder %v158_v40, 2 }
  0xc8   :  { %v369_v17 = vadd.s32 4294967294, %v132_v16 }
  0xca   :  { %vm370_vm8 = vcmp.lt.s32.totalorder %v369_v17, 0 }
  0xcb   :  { %v135_v19 = vsel %vm370_vm8, 0, %v369_v17 }
  0xcc   :  { %v136_v22 = vsub.s32 32, %v135_v19  ;;  %v140_v23 = vsub.s32 4294967266, %v135_v19  ;;  %v137_v24 = vshll.u32 %v128_v13, %v135_v19 }
  0xce   :  { %v138_v25 = vshrl.u32 %v120_v21, %v136_v22  ;;  %v141_v26 = vadd.s32 127, %v140_v23 }
  0xd0   :  { %v139_v27 = vor.u32 %v138_v25, %v137_v24  ;;  %v142_v28 = vshll.u32 %v141_v26, 23 }
  0xd2   :  { %v143_v29 = vor.u32 4788187, %v142_v28  ;;  %v146_v31 = vcvt.s32.f32 %v139_v27 }
  0xd4   :  { %v144_v30 = vand.u32 2147483647, %v143_v29 }
  0xd6   :  { %v147_v32 = vmul.f32 %v146_v31, %v144_v30 }
  0xd8   :  { %v148_v33 = vxor.u32 2147483648, %v147_v32 }
  0xda   :  { %v149_v35 = vsel %vm66_vm9, %v148_v33, %v147_v32 }
  0xdb   :  { %v152_v36 = vsel %vm65_vm10, %v594_v18, %v149_v35  ;;  %v270_v18 = vld [vmem:[#allocation5 + $0x58] sm:$0xff] }
  0xdc   :  { %464 = vcosq.f32 %v152_v36  ;;  %417 = vmatpush3.msra.mxu1 %v270_v18 }
  0xdd   :  { %466 = vsinq.f32 %v152_v36  ;;  %418 = vmatprep.subr.mxu1 %v543_v1 }
  0xde   :  { %419 = vmatpush3.msra.mxu1 %v269_v52 }
  0xdf   :  { %420 = vmatprep.subr.mxu1 %v543_v1 }
  0xe0   :  { %421 = vmatpush3.msra.mxu1 %v268_v53 }
  0xe1   :  { %422 = vmatprep.subr.mxu1 %v543_v1 }
  0xe2   :  { %423 = vmatpush3.msra.mxu1 %v267_v54 }
  0xe3   :  { %424 = vmatprep.subr.mxu1 %v543_v1 }
  0xe4   :  { %425 = vmatpush3.msra.mxu1 %v266_v55 }
  0xe5   :  { %426 = vmatprep.subr.mxu1 %v543_v1 }
  0xe6   :  { %427 = vmatpush3.msra.mxu1 %v265_v56 }
  0xe7   :  { %428 = vmatprep.subr.mxu1 %v543_v1 }
  0xe8   :  { %429 = vmatpush3.msra.mxu1 %v264_v57 }
  0xe9   :  { %v465_v41 = vpop.eup %464  ;;  %430 = vmatprep.subr.mxu1 %v543_v1 }
  0xea   :  { %v467_v42 = vpop.eup %466  ;;  %v164_v43 = vxor.u32 2147483648, %v465_v41  ;;  %431 = vmatpush3.msra.mxu1 %v263_v58 }
  0xeb   :  { %v161_v44 = vxor.u32 2147483648, %v467_v42  ;;  %432 = vmatprep.subr.mxu1 %v543_v1 }
  0xec   :  { %v165_v45 = vsel %vm163_vm11, %v164_v43, %v467_v42  ;;  %433 = vmatpush3.msra.mxu1 %v262_v59 }
  0xed   :  { %v162_v46 = vsel %vm160_vm12, %v465_v41, %v161_v44  ;;  %434 = vmatprep.subr.mxu1 %v543_v1 }
  0xee   :  { %v166_v20 = vsel %vm159_vm13, %v162_v46, %v165_v45  ;;  %435 = vmatpush3.msra.mxu1 %v261_v60 }
  0xef   :  { %v167_v47 = vsel %vm156_vm15, nan, %v166_v20  ;;  %436 = vmatprep.subr.mxu1 %v543_v1 }
  0xf0   :  { %406 = vmatmul.mubr.msk.f32.vlgmr.msra.gmra.mxu0 %vm178_vm14, %v167_v47  ;;  %437 = vmatpush3.msra.mxu1 %v260_v61 }
  0xf1   :  { %438 = vmatprep.subr.mxu1 %v543_v1  ;;  %v374_v1 = vld [vmem:[%s641_s2 + $0x1] ss:$0 sm:$0xff] }
  0xf2   :  { %439 = vmatpush3.msra.mxu1 %v259_v62 }
 0x1b0   :  { %v248_v0 = vpop.f32.mrf.mxu0 }
 0x1b1   :  { %v249_v2 = vadd.f32 %v371_v63, %v248_v0 }
 0x1b2   :  { %v407_v3 = vpop.f32.mrf.mxu0 }
 0x1b3   :  { %v373_v4 = vmul.f32 -1.442695, %v249_v2 }
 0x1b5   :  { %468 = vpow2.f32 %v373_v4 }
 0x1c2   :  { %v469_v5 = vpop.eup %468 }
 0x1c3   :  { %v255_v6 = vadd.f32 1.0, %v469_v5 }
 0x1c5   :  { %470 = vrcp.f32 %v255_v6 }
 0x1d2   :  { %v471_v7 = vpop.eup %470 }
 0x1d3   :  { %v258_v8 = vmul.f32 %v471_v7, %v249_v2 }
 0x1d5   :  { %441 = vmatmul.mubr.f32.vlgmr.msra.gmra.mxu1 %v258_v8 }
 0x295   :  { %v345_v9 = vpop.f32.mrf.mxu1 }
 0x296   :  { %v346_v10 = vadd.f32 %v374_v1, %v345_v9 }
 0x297   :  { %v442_v11 = vpop.f32.mrf.mxu1 }
 0x298   :  { %349 = vst [vmem:[#allocation7] sm:$0xff] %v346_v10 }
 0x299   :  { %523 = shalt.err (!%p520_p0)
}
 0x29a   :  { %359 = dma.vmem_to_hbm [thread:$0]  %s357_s5, 128, %s643_s4, [#allocation4]  }
 0x29b   :  { %536 = dma.done.wait [#allocation4], 128  }
 0x29c   :  { %537 = vsyncadd [#allocation4], 4294967168 }
 0x29d   :  { %363 = vsyncpa [#allocation3], 1 }
 0x29e   :  { %364 = vsyncpa [#allocation6], 1 }
 0x29f   :  { %365 = vsyncpa [#allocation4], 1 }

</bundles_post_ra>
